<compile_context>
chip_gen: v5e
topology: v5e:2x2
jax: 0.10.0
libtpu: 0.0.40
codegen_flags: <defaults>
</compile_context>

<pallas_src>
import math

import jax
import jax.numpy as jnp
from jax.experimental import pallas as pl
from jax.experimental.pallas import tpu as pltpu


def _round_up(x, m):
    return ((x + m - 1) // m) * m


def mixed_sf_forward_kernel(state_ref, action_ref,
                            w1s_ref, w1a_ref, b1_ref,
                            w2_ref, b2_ref,
                            w3_ref, b3_ref,
                            wpsi_ref, bpsi_ref,
                            wq_ref, bq_ref,
                            q_ref):
    """One batch tile: 4 MXU matmuls (bf16 in / f32 acc) + VPU/XLU Q head."""
    s = state_ref[...].astype(jnp.bfloat16)
    a = action_ref[...].astype(jnp.bfloat16)

    # Layer 1: concat(state, action) @ W1 == state @ W1_s + action @ W1_a.
    h = (jnp.dot(s, w1s_ref[...], preferred_element_type=jnp.float32)
         + jnp.dot(a, w1a_ref[...], preferred_element_type=jnp.float32)
         + b1_ref[...])
    h = jnp.maximum(h, 0.0)

    h = jnp.dot(h.astype(jnp.bfloat16), w2_ref[...],
                preferred_element_type=jnp.float32) + b2_ref[...]
    h = jnp.maximum(h, 0.0)

    h = jnp.dot(h.astype(jnp.bfloat16), w3_ref[...],
                preferred_element_type=jnp.float32) + b3_ref[...]
    h = jnp.maximum(h, 0.0)

    psi = jnp.dot(h.astype(jnp.bfloat16), wpsi_ref[...],
                  preferred_element_type=jnp.float32) + bpsi_ref[...]
    psi = jnp.maximum(psi, 0.0)

    # Q head: N=1 matmul would waste >99% of the MXU; do it on the VPU/XLU.
    # wq_ref is a (1, feat_dim) f32 row, bq_ref is (1, 1).
    q = jnp.sum(psi * wq_ref[...], axis=-1, keepdims=True) + bq_ref[...]
    q_ref[...] = q.astype(q_ref.dtype)


def mixed_sf_forward(state, action, params, *, batch_tile=512):
    """Batch-tiled pallas_call; weights stay VMEM-resident across tiles."""
    state = state.astype(jnp.float32)
    action = action.astype(jnp.float32)
    B, state_dim = state.shape
    action_dim = action.shape[1]
    hidden_dim = params["w2"].shape[0]
    feat_dim = params["wpsi"].shape[1]

    # Tile the batch (f32 sublane => multiple of 8).  Pad the last partial
    # tile with zeros in the wrapper; padded rows are sliced off below.
    TB = min(batch_tile, _round_up(B, 8))
    padded_B = _round_up(B, TB)
    if padded_B != B:
        pad = padded_B - B
        state = jnp.pad(state, ((0, pad), (0, 0)))
        action = jnp.pad(action, ((0, pad), (0, 0)))
    grid = (padded_B // TB,)

    args = (state, action,
            params["w1_s"], params["w1_a"], params["b1"],
            params["w2"], params["b2"],
            params["w3"], params["b3"],
            params["wpsi"], params["bpsi"],
            params["wq"], params["bq"])

    def act_spec(d):
        return pl.BlockSpec((TB, d), lambda i: (i, 0))

    def resident_spec(arr):
        # Same block index for every grid step -> fetched once, VMEM-resident.
        return pl.BlockSpec(arr.shape, lambda i: (0, 0))

    in_specs = [act_spec(state_dim), act_spec(action_dim)] + \
               [resident_spec(a) for a in args[2:]]
    out_spec = pl.BlockSpec((TB, 1), lambda i: (i, 0))

    flops = 2 * padded_B * (state_dim * hidden_dim
                            + action_dim * hidden_dim
                            + 2 * hidden_dim * hidden_dim
                            + hidden_dim * feat_dim
                            + feat_dim)
    bytes_accessed = (sum(int(a.size) * a.dtype.itemsize for a in args)
                      + padded_B * 4)  # + f32 (B, 1) output
    cost = pl.CostEstimate(flops=flops, transcendentals=0,
                           bytes_accessed=bytes_accessed)

    q = pl.pallas_call(
        mixed_sf_forward_kernel,
        out_shape=jax.ShapeDtypeStruct((padded_B, 1), jnp.float32),
        grid=grid,
        in_specs=in_specs,
        out_specs=out_spec,
        compiler_params=pltpu.CompilerParams(
            dimension_semantics=("parallel",)),   # v7x: shard tiles over 2 TCs
        cost_estimate=cost,
    )(*args)
    return q[:B]


def init_params(key, state_dim, action_dim, feat_dim, hidden_dim):
    """nn.Linear-style init (U(-1/sqrt(fan_in), +)).

    Weights are stored TRANSPOSED vs PyTorch, i.e. (in_features, out_features),
    and cast to bf16 (matmul operands); biases stay f32 as (1, out) rows.
    W1 is pre-split into state / action halves; Wq is kept as a (1, feat) row.
    """
    def linear(k, fan_in, fan_out):
        kw, kb = jax.random.split(k)
        bound = 1.0 / math.sqrt(fan_in)
        w = jax.random.uniform(kw, (fan_in, fan_out), jnp.float32, -bound, bound)
        b = jax.random.uniform(kb, (1, fan_out), jnp.float32, -bound, bound)
        return w, b

    ks = jax.random.split(key, 6)
    in_dim = state_dim + action_dim
    w1, b1 = linear(ks[0], in_dim, hidden_dim)
    w2, b2 = linear(ks[1], hidden_dim, hidden_dim)
    w3, b3 = linear(ks[2], hidden_dim, hidden_dim)
    wpsi, bpsi = linear(ks[3], hidden_dim, feat_dim)
    # phi_l1 is part of __init__ but unused by forward(); kept for parity
    # and deliberately NOT passed to the kernel.
    wphi, bphi = linear(ks[4], hidden_dim, feat_dim)
    wq_col, bq = linear(ks[5], feat_dim, 1)

    bf16 = lambda w: w.astype(jnp.bfloat16)
    return dict(
        w1_s=bf16(w1[:state_dim]), w1_a=bf16(w1[state_dim:]), b1=b1,
        w2=bf16(w2), b2=b2,
        w3=bf16(w3), b3=b3,
        wpsi=bf16(wpsi), bpsi=bpsi,
        wphi=bf16(wphi), bphi=bphi,
        wq=wq_col.T, bq=bq,                       # (1, feat_dim) f32 row
    )


def mixed_sf_forward_ref(state, action, params):
    """Pure-JAX reference of the same mixed-precision math."""
    s = state.astype(jnp.bfloat16)
    a = action.astype(jnp.bfloat16)
    h = (jnp.dot(s, params["w1_s"], preferred_element_type=jnp.float32)
         + jnp.dot(a, params["w1_a"], preferred_element_type=jnp.float32)
         + params["b1"])
    h = jax.nn.relu(h)
    h = jax.nn.relu(jnp.dot(h.astype(jnp.bfloat16), params["w2"],
                            preferred_element_type=jnp.float32) + params["b2"])
    h = jax.nn.relu(jnp.dot(h.astype(jnp.bfloat16), params["w3"],
                            preferred_element_type=jnp.float32) + params["b3"])
    psi = jax.nn.relu(jnp.dot(h.astype(jnp.bfloat16), params["wpsi"],
                              preferred_element_type=jnp.float32) + params["bpsi"])
    return jnp.sum(psi * params["wq"], axis=-1, keepdims=True) + params["bq"]


if __name__ == "__main__":
    state_dim, action_dim, feat_dim, hidden_dim = 8, 4, 16, 32

    key = jax.random.PRNGKey(0)
    kp, ks, ka = jax.random.split(key, 3)
    params = init_params(kp, state_dim, action_dim, feat_dim, hidden_dim)

    # Exact-tile batch.
    batch = 8
    state = jax.random.normal(ks, (batch, state_dim), jnp.float32)
    action = jax.random.normal(ka, (batch, action_dim), jnp.float32)
    q = mixed_sf_forward(state, action, params)
    jax.block_until_ready(q)
    q_ref = mixed_sf_forward_ref(state, action, params)
    assert q.shape == (batch, 1), q.shape
    assert jnp.allclose(q, q_ref, atol=2e-3, rtol=2e-3), "mismatch vs JAX reference"

    # Ragged batch (exercises wrapper-side padding + slice).
    batch2 = 10
    ks2, ka2 = jax.random.split(jax.random.PRNGKey(1))
    state2 = jax.random.normal(ks2, (batch2, state_dim), jnp.float32)
    action2 = jax.random.normal(ka2, (batch2, action_dim), jnp.float32)
    q2 = mixed_sf_forward(state2, action2, params)
    jax.block_until_ready(q2)
    q2_ref = mixed_sf_forward_ref(state2, action2, params)
    assert q2.shape == (batch2, 1), q2.shape
    assert jnp.allclose(q2, q2_ref, atol=2e-3, rtol=2e-3), "mismatch (ragged batch)"

    print("KERNEL_OK")
</pallas_src>

<mosaic_0001>
module attributes {stable_mosaic.version = 11 : i64} {
  func.func @mixed_sf_forward_kernel(%arg0: i32, %arg1: memref<8x8xf32, #tpu.memory_space<vmem>>, %arg2: memref<8x4xf32, #tpu.memory_space<vmem>>, %arg3: memref<8x32xbf16, #tpu.memory_space<vmem>>, %arg4: memref<4x32xbf16, #tpu.memory_space<vmem>>, %arg5: memref<1x32xf32, #tpu.memory_space<vmem>>, %arg6: memref<32x32xbf16, #tpu.memory_space<vmem>>, %arg7: memref<1x32xf32, #tpu.memory_space<vmem>>, %arg8: memref<32x32xbf16, #tpu.memory_space<vmem>>, %arg9: memref<1x32xf32, #tpu.memory_space<vmem>>, %arg10: memref<32x16xbf16, #tpu.memory_space<vmem>>, %arg11: memref<1x16xf32, #tpu.memory_space<vmem>>, %arg12: memref<1x16xf32, #tpu.memory_space<vmem>>, %arg13: memref<1x1xf32, #tpu.memory_space<vmem>>, %arg14: memref<8x1xf32, #tpu.memory_space<vmem>>) attributes {dimension_semantics = [#tpu.dimension_semantics<parallel>], iteration_bounds = array<i64: 1>, scalar_prefetch = 0 : i64, scratch_operands = 0 : i64, tpu.core_type = #tpu.core_type<tc>, window_params = [{transform_indices = @transform_0, window_bounds = array<i64: 8, 8>}, {transform_indices = @transform_1, window_bounds = array<i64: 8, 4>}, {pipeline_mode = #tpu.pipeline_mode<synchronous>, transform_indices = @transform_2, window_bounds = array<i64: 8, 32>}, {pipeline_mode = #tpu.pipeline_mode<synchronous>, transform_indices = @transform_3, window_bounds = array<i64: 4, 32>}, {pipeline_mode = #tpu.pipeline_mode<synchronous>, transform_indices = @transform_4, window_bounds = array<i64: 1, 32>}, {pipeline_mode = #tpu.pipeline_mode<synchronous>, transform_indices = @transform_5, window_bounds = array<i64: 32, 32>}, {pipeline_mode = #tpu.pipeline_mode<synchronous>, transform_indices = @transform_6, window_bounds = array<i64: 1, 32>}, {pipeline_mode = #tpu.pipeline_mode<synchronous>, transform_indices = @transform_7, window_bounds = array<i64: 32, 32>}, {pipeline_mode = #tpu.pipeline_mode<synchronous>, transform_indices = @transform_8, window_bounds = array<i64: 1, 32>}, {pipeline_mode = #tpu.pipeline_mode<synchronous>, transform_indices = @transform_9, window_bounds = array<i64: 32, 16>}, {pipeline_mode = #tpu.pipeline_mode<synchronous>, transform_indices = @transform_10, window_bounds = array<i64: 1, 16>}, {pipeline_mode = #tpu.pipeline_mode<synchronous>, transform_indices = @transform_11, window_bounds = array<i64: 1, 16>}, {pipeline_mode = #tpu.pipeline_mode<synchronous>, transform_indices = @transform_12, window_bounds = array<i64: 1, 1>}, {transform_indices = @transform_13, window_bounds = array<i64: 8, 1>}]} {
    %c0 = arith.constant 0 : index
    %c0_0 = arith.constant 0 : index
    %0 = vector.load %arg1[%c0, %c0_0] : memref<8x8xf32, #tpu.memory_space<vmem>>, vector<8x8xf32>
    %1 = arith.truncf %0 : vector<8x8xf32> to vector<8x8xbf16>
    %c0_1 = arith.constant 0 : index
    %c0_2 = arith.constant 0 : index
    %2 = vector.load %arg2[%c0_1, %c0_2] : memref<8x4xf32, #tpu.memory_space<vmem>>, vector<8x4xf32>
    %3 = arith.truncf %2 : vector<8x4xf32> to vector<8x4xbf16>
    %c0_3 = arith.constant 0 : index
    %c0_4 = arith.constant 0 : index
    %4 = vector.load %arg3[%c0_3, %c0_4] : memref<8x32xbf16, #tpu.memory_space<vmem>>, vector<8x32xbf16>
    %cst = arith.constant dense<0.000000e+00> : vector<8x32xf32>
    %5 = tpu.matmul %1, %4, %cst {dimension_numbers = #tpu.dot_dimension_numbers<[1], [0], [0], [1], [0, 0, 1, 1], [], []>} : vector<8x8xbf16>, vector<8x32xbf16>, vector<8x32xf32> -> vector<8x32xf32>
    %c0_5 = arith.constant 0 : index
    %c0_6 = arith.constant 0 : index
    %6 = vector.load %arg4[%c0_5, %c0_6] : memref<4x32xbf16, #tpu.memory_space<vmem>>, vector<4x32xbf16>
    %cst_7 = arith.constant dense<0.000000e+00> : vector<8x32xf32>
    %7 = tpu.matmul %3, %6, %cst_7 {dimension_numbers = #tpu.dot_dimension_numbers<[1], [0], [0], [1], [0, 0, 1, 1], [], []>} : vector<8x4xbf16>, vector<4x32xbf16>, vector<8x32xf32> -> vector<8x32xf32>
    %8 = arith.addf %5, %7 : vector<8x32xf32>
    %c0_8 = arith.constant 0 : index
    %c0_9 = arith.constant 0 : index
    %9 = vector.load %arg5[%c0_8, %c0_9] : memref<1x32xf32, #tpu.memory_space<vmem>>, vector<1x32xf32>
    %10 = vector.broadcast %9 : vector<1x32xf32> to vector<8x32xf32>
    %11 = arith.addf %8, %10 : vector<8x32xf32>
    %cst_10 = arith.constant 0.000000e+00 : f32
    %12 = vector.broadcast %cst_10 : f32 to vector<8x32xf32>
    %13 = arith.maximumf %11, %12 : vector<8x32xf32>
    %14 = arith.truncf %13 : vector<8x32xf32> to vector<8x32xbf16>
    %c0_11 = arith.constant 0 : index
    %c0_12 = arith.constant 0 : index
    %15 = vector.load %arg6[%c0_11, %c0_12] : memref<32x32xbf16, #tpu.memory_space<vmem>>, vector<32x32xbf16>
    %cst_13 = arith.constant dense<0.000000e+00> : vector<8x32xf32>
    %16 = tpu.matmul %14, %15, %cst_13 {dimension_numbers = #tpu.dot_dimension_numbers<[1], [0], [0], [1], [0, 0, 1, 1], [], []>} : vector<8x32xbf16>, vector<32x32xbf16>, vector<8x32xf32> -> vector<8x32xf32>
    %c0_14 = arith.constant 0 : index
    %c0_15 = arith.constant 0 : index
    %17 = vector.load %arg7[%c0_14, %c0_15] : memref<1x32xf32, #tpu.memory_space<vmem>>, vector<1x32xf32>
    %18 = vector.broadcast %17 : vector<1x32xf32> to vector<8x32xf32>
    %19 = arith.addf %16, %18 : vector<8x32xf32>
    %cst_16 = arith.constant 0.000000e+00 : f32
    %20 = vector.broadcast %cst_16 : f32 to vector<8x32xf32>
    %21 = arith.maximumf %19, %20 : vector<8x32xf32>
    %22 = arith.truncf %21 : vector<8x32xf32> to vector<8x32xbf16>
    %c0_17 = arith.constant 0 : index
    %c0_18 = arith.constant 0 : index
    %23 = vector.load %arg8[%c0_17, %c0_18] : memref<32x32xbf16, #tpu.memory_space<vmem>>, vector<32x32xbf16>
    %cst_19 = arith.constant dense<0.000000e+00> : vector<8x32xf32>
    %24 = tpu.matmul %22, %23, %cst_19 {dimension_numbers = #tpu.dot_dimension_numbers<[1], [0], [0], [1], [0, 0, 1, 1], [], []>} : vector<8x32xbf16>, vector<32x32xbf16>, vector<8x32xf32> -> vector<8x32xf32>
    %c0_20 = arith.constant 0 : index
    %c0_21 = arith.constant 0 : index
    %25 = vector.load %arg9[%c0_20, %c0_21] : memref<1x32xf32, #tpu.memory_space<vmem>>, vector<1x32xf32>
    %26 = vector.broadcast %25 : vector<1x32xf32> to vector<8x32xf32>
    %27 = arith.addf %24, %26 : vector<8x32xf32>
    %cst_22 = arith.constant 0.000000e+00 : f32
    %28 = vector.broadcast %cst_22 : f32 to vector<8x32xf32>
    %29 = arith.maximumf %27, %28 : vector<8x32xf32>
    %30 = arith.truncf %29 : vector<8x32xf32> to vector<8x32xbf16>
    %c0_23 = arith.constant 0 : index
    %c0_24 = arith.constant 0 : index
    %31 = vector.load %arg10[%c0_23, %c0_24] : memref<32x16xbf16, #tpu.memory_space<vmem>>, vector<32x16xbf16>
    %cst_25 = arith.constant dense<0.000000e+00> : vector<8x16xf32>
    %32 = tpu.matmul %30, %31, %cst_25 {dimension_numbers = #tpu.dot_dimension_numbers<[1], [0], [0], [1], [0, 0, 1, 1], [], []>} : vector<8x32xbf16>, vector<32x16xbf16>, vector<8x16xf32> -> vector<8x16xf32>
    %c0_26 = arith.constant 0 : index
    %c0_27 = arith.constant 0 : index
    %33 = vector.load %arg11[%c0_26, %c0_27] : memref<1x16xf32, #tpu.memory_space<vmem>>, vector<1x16xf32>
    %34 = vector.broadcast %33 : vector<1x16xf32> to vector<8x16xf32>
    %35 = arith.addf %32, %34 : vector<8x16xf32>
    %cst_28 = arith.constant 0.000000e+00 : f32
    %36 = vector.broadcast %cst_28 : f32 to vector<8x16xf32>
    %37 = arith.maximumf %35, %36 : vector<8x16xf32>
    %c0_29 = arith.constant 0 : index
    %c0_30 = arith.constant 0 : index
    %38 = vector.load %arg12[%c0_29, %c0_30] : memref<1x16xf32, #tpu.memory_space<vmem>>, vector<1x16xf32>
    %39 = vector.broadcast %38 : vector<1x16xf32> to vector<8x16xf32>
    %40 = arith.mulf %37, %39 : vector<8x16xf32>
    %cst_31 = arith.constant dense<0.000000e+00> : vector<8xf32>
    %41 = vector.multi_reduction <add>, %40, %cst_31 [1] : vector<8x16xf32> to vector<8xf32>
    %42 = vector.shape_cast %41 : vector<8xf32> to vector<8x1xf32>
    %c0_32 = arith.constant 0 : index
    %c0_33 = arith.constant 0 : index
    %43 = vector.load %arg13[%c0_32, %c0_33] : memref<1x1xf32, #tpu.memory_space<vmem>>, vector<1x1xf32>
    %44 = vector.broadcast %43 : vector<1x1xf32> to vector<8x1xf32>
    %45 = arith.addf %42, %44 : vector<8x1xf32>
    %c0_34 = arith.constant 0 : index
    %c0_35 = arith.constant 0 : index
    %46 = vector.load %arg14[%c0_34, %c0_35] : memref<8x1xf32, #tpu.memory_space<vmem>>, vector<8x1xf32>
    tpu.vector_store %arg14[%c0_34, %c0_35], %45 {strides = array<i32>} : memref<8x1xf32, #tpu.memory_space<vmem>>, vector<8x1xf32>,
    return
  }
  func.func @transform_0(%arg0: i32) -> (i32, i32) {
    %c0_i32 = arith.constant 0 : i32
    %c0_i32_0 = arith.constant 0 : i32
    return %arg0, %c0_i32 : i32, i32
  }
  func.func @transform_1(%arg0: i32) -> (i32, i32) {
    %c0_i32 = arith.constant 0 : i32
    %c0_i32_0 = arith.constant 0 : i32
    return %arg0, %c0_i32 : i32, i32
  }
  func.func @transform_2(%arg0: i32) -> (i32, i32) {
    %c0_i32 = arith.constant 0 : i32
    %c0_i32_0 = arith.constant 0 : i32
    %c0_i32_1 = arith.constant 0 : i32
    return %c0_i32, %c0_i32_0 : i32, i32
  }
  func.func @transform_3(%arg0: i32) -> (i32, i32) {
    %c0_i32 = arith.constant 0 : i32
    %c0_i32_0 = arith.constant 0 : i32
    %c0_i32_1 = arith.constant 0 : i32
    return %c0_i32, %c0_i32_0 : i32, i32
  }
  func.func @transform_4(%arg0: i32) -> (i32, i32) {
    %c0_i32 = arith.constant 0 : i32
    %c0_i32_0 = arith.constant 0 : i32
    %c0_i32_1 = arith.constant 0 : i32
    return %c0_i32, %c0_i32_0 : i32, i32
  }
  func.func @transform_5(%arg0: i32) -> (i32, i32) {
    %c0_i32 = arith.constant 0 : i32
    %c0_i32_0 = arith.constant 0 : i32
    %c0_i32_1 = arith.constant 0 : i32
    return %c0_i32, %c0_i32_0 : i32, i32
  }
  func.func @transform_6(%arg0: i32) -> (i32, i32) {
    %c0_i32 = arith.constant 0 : i32
    %c0_i32_0 = arith.constant 0 : i32
    %c0_i32_1 = arith.constant 0 : i32
    return %c0_i32, %c0_i32_0 : i32, i32
  }
  func.func @transform_7(%arg0: i32) -> (i32, i32) {
    %c0_i32 = arith.constant 0 : i32
    %c0_i32_0 = arith.constant 0 : i32
    %c0_i32_1 = arith.constant 0 : i32
    return %c0_i32, %c0_i32_0 : i32, i32
  }
  func.func @transform_8(%arg0: i32) -> (i32, i32) {
    %c0_i32 = arith.constant 0 : i32
    %c0_i32_0 = arith.constant 0 : i32
    %c0_i32_1 = arith.constant 0 : i32
    return %c0_i32, %c0_i32_0 : i32, i32
  }
  func.func @transform_9(%arg0: i32) -> (i32, i32) {
    %c0_i32 = arith.constant 0 : i32
    %c0_i32_0 = arith.constant 0 : i32
    %c0_i32_1 = arith.constant 0 : i32
    return %c0_i32, %c0_i32_0 : i32, i32
  }
  func.func @transform_10(%arg0: i32) -> (i32, i32) {
    %c0_i32 = arith.constant 0 : i32
    %c0_i32_0 = arith.constant 0 : i32
    %c0_i32_1 = arith.constant 0 : i32
    return %c0_i32, %c0_i32_0 : i32, i32
  }
  func.func @transform_11(%arg0: i32) -> (i32, i32) {
    %c0_i32 = arith.constant 0 : i32
    %c0_i32_0 = arith.constant 0 : i32
    %c0_i32_1 = arith.constant 0 : i32
    return %c0_i32, %c0_i32_0 : i32, i32
  }
  func.func @transform_12(%arg0: i32) -> (i32, i32) {
    %c0_i32 = arith.constant 0 : i32
    %c0_i32_0 = arith.constant 0 : i32
    %c0_i32_1 = arith.constant 0 : i32
    return %c0_i32, %c0_i32_0 : i32, i32
  }
  func.func @transform_13(%arg0: i32) -> (i32, i32) {
    %c0_i32 = arith.constant 0 : i32
    %c0_i32_0 = arith.constant 0 : i32
    return %arg0, %c0_i32 : i32, i32
  }
}

</mosaic_0001>

<bundles_post_ra>
// kernel: tpu_custom_call.1
= control target key start
LH: loop header
LB: loop body
LE: loop exit
PB: predicated region body
PF: predicated region fallthrough
CT: control target
= control target key end

     0   :  { %s526_s0 = inlined_call_operand.hbm [shape: f32[8,8], index: 0, kind: input, shape index: {}]   ;;  %s527_s1 = inlined_call_operand.vmem [shape: f32[8,4], index: 1, kind: input, shape index: {}]   ;;  %s528_s2 = inlined_call_operand.hbm [shape: bf16[8,32], index: 2, kind: input, shape index: {}]   ;;  %s529_s3 = inlined_call_operand.hbm [shape: bf16[4,32], index: 3, kind: input, shape index: {}]   ;;  %s530_s4 = inlined_call_operand.vmem [shape: f32[1,32], index: 4, kind: input, shape index: {}]   ;;  %s531_s5 = inlined_call_operand.vmem [shape: bf16[32,32], index: 5, kind: input, shape index: {}]   ;;  %s532_s6 = inlined_call_operand.vmem [shape: f32[1,32], index: 6, kind: input, shape index: {}]   ;;  %s533_s7 = inlined_call_operand.vmem [shape: bf16[32,32], index: 7, kind: input, shape index: {}]   ;;  %s534_s8 = inlined_call_operand.vmem [shape: f32[1,32], index: 8, kind: input, shape index: {}]   ;;  %s535_s9 = inlined_call_operand.vmem [shape: bf16[32,16], index: 9, kind: input, shape index: {}]   ;;  %s536_s10 = inlined_call_operand.vmem [shape: f32[1,16], index: 10, kind: input, shape index: {}]   ;;  %s537_s11 = inlined_call_operand.vmem [shape: f32[1,16], index: 11, kind: input, shape index: {}]   ;;  %s538_s12 = inlined_call_operand.<no memory space> [shape: f32[1,1], index: 12, kind: input, shape index: {}]   ;;  %s539_s13 = inlined_call_operand.vmem [shape: f32[8,1], index: 13, kind: output, shape index: {}]  }
   0x1   :  { %v18_v0 = vstv %s538_s12 }
   0x2   :  { %19 = vst [vmem:[#allocation2] sm:$0x1] %v18_v0 }
   0x3   :  { %20 = vsyncpa [#allocation4], 0 }
   0x4   :  { %21 = vsyncpa [#allocation6], 0  ;;  %s40_s29 = sshll.u32 %s528_s2, 4  ;;  %s399_s30 = smov [#allocation5]   ;;  %s41_s29 = int_to_ptr.hbm [resolvable:$true] %s40_s29 }
   0x5   :  { %s42_s14 = sshll.u32 %s399_s30, 4  ;;  %s27_s17 = sshll.u32 %s526_s0, 4  ;;  %s43_s14 = int_to_ptr.vmem [resolvable:$true] %s42_s14  ;;  %s28_s17 = int_to_ptr.hbm [resolvable:$true] %s27_s17 }
   0x6   :  { %45 = dma.hbm_to_vmem [thread:$0]  %s41_s29, 64, %s43_s14, [#allocation6]  }
   0x7   :  { %s400_s18 = smov [#allocation3]   ;;  %s51_s21 = sshll.u32 %s529_s3, 4  ;;  %s52_s21 = int_to_ptr.hbm [resolvable:$true] %s51_s21 }
   0x8   :  { %s29_s19 = sshll.u32 %s400_s18, 4  ;;  %s401_s2 = smov [#allocation7]   ;;  %s30_s19 = int_to_ptr.vmem [resolvable:$true] %s29_s19 }
   0x9   :  { %32 = dma.hbm_to_vmem [thread:$0]  %s28_s17, 128, %s30_s19, [#allocation4]  }
   0xa   :  { %s53_s22 = sshll.u32 %s401_s2, 4  ;;  %s54_s22 = int_to_ptr.vmem [resolvable:$true] %s53_s22 }
   0xb   :  { %56 = dma.hbm_to_vmem [thread:$0]  %s52_s21, 32, %s54_s22, [#allocation6]  }
   0xc   :  { %395 = dma.done.wait [#allocation4], 128  }
   0xd   :  { %396 = vsyncadd [#allocation4], 4294967168 }
   0xe   :  { %397 = dma.done.wait [#allocation6], 96  }
   0xf   :  { %398 = vsyncadd [#allocation6], 4294967200  ;;  %vm98_vm0 = vcmask 1041408   ;;  %vm119_vm1 = vcmask 1043456   ;;  %v93_v1 = vld [vmem:[#allocation7] sm:$0x3] }
  0x10   :  { %v92_v2 = vld [vmem:[#allocation5] sm:$0xf]  ;;  %v90_v3 = vld [vmem:[%s527_s1] sm:$0xff]  ;;  %vm94_vm2 = vcmask 31744   ;;  %v100_v4 = vsel %vm98_vm0, %v93_v1, 0  ;;  %vm115_vm3 = vcmask 64512  }
  0x11   :  { %v121_v5 = vsel %vm119_vm1, %v92_v2, 0  ;;  %v91_v6 = vpack.c.bf16 %v90_v3, %v90_v3  ;;  %v88_v7 = vld [vmem:[#allocation3] sm:$0xff]  ;;  %109 = vmatpush.bf16.msra.mxu0 %v100_v4  ;;  %v317_v11 = vld [vmem:[%s530_s4] ss:$0 sm:$0xff]  ;;  %vm163_vm4 = vcmask 261120   ;;  %vm262_vm5 = vcmask 130048  }
  0x12   :  { %130 = vmatpush.bf16.msra.mxu1 %v121_v5  ;;  %v89_v8 = vpack.c.bf16 %v88_v7, %v88_v7  ;;  %v309_v9 = vld [vmem:[%s531_s5 + $0x8] sm:$0xff]  ;;  %v308_v10 = vld [vmem:[%s531_s5] sm:$0xff]  ;;  %vm271_vm6 = vcmask 7168  }
  0x13   :  { %173 = vmatpush.bf16.msra.mxu2 %v309_v9  ;;  %v311_v20 = vld [vmem:[%s533_s7 + $0x8] sm:$0xff]  ;;  %v310_v21 = vld [vmem:[%s533_s7] sm:$0xff] }
  0x14   :  { %279 = vmatmul.msk.bf16.vlgmr.msra.gmra.mxu0 %vm94_vm2, %v91_v6  ;;  %211 = vmatpush.bf16.msra.mxu3 %v311_v20  ;;  %v313_v22 = vld [vmem:[%s535_s9 + $0x8] sm:$0xff]  ;;  %v312_v23 = vld [vmem:[%s535_s9] sm:$0xff] }
  0x15   :  { %280 = vmatmul.msk.bf16.vlgmr.msra.gmra.mxu1 %vm115_vm3, %v89_v8  ;;  %249 = vmatpush.bf16.msrb.mxu0 %v313_v22  ;;  %v318_v24 = vld [vmem:[%s532_s6] ss:$0 sm:$0xff] }
  0x16   :  { %v319_v30 = vld [vmem:[%s534_s8] ss:$0 sm:$0xff] }
  0x17   :  { %174 = vmatpush.bf16.msra.mxu2 %v308_v10  ;;  %v320_v36 = vld [vmem:[%s536_s10] ss:$0 sm:$0xff] }
  0x18   :  { %212 = vmatpush.bf16.msra.mxu3 %v310_v21  ;;  %v321_v39 = vld [vmem:[%s537_s11] ss:$0 sm:$0xff] }
  0x19   :  { %250 = vmatpush.bf16.msrb.mxu0 %v312_v23  ;;  %v322_v44 = vld [vmem:[#allocation2] ss:$0 sm:$0xff] }
  0x91   :  { %v111_v12 = vpop.f32.mrf.mxu0 }
  0x92   :  { %v132_v13 = vpop.f32.mrf.mxu1 }
  0x93   :  { %v133_v14 = vadd.f32 %v132_v13, %v111_v12 }
  0x95   :  { %v140_v15 = vadd.f32 %v317_v11, %v133_v14 }
  0x97   :  { %v141_v16 = vmax.f32 %v140_v15, 0.0 }
  0x99   :  { %v142_v17 = vpack.c.bf16 %v141_v16, %v141_v16  ;;  %v113_v18 = vpop.f32.mrf.mxu0 }
  0x9a   :  { %v134_v19 = vpop.f32.mrf.mxu1 }
  0x9b   :  { %289 = vmatmul.msk.bf16.vlgmr.msra.gmra.mxu2 %vm163_vm4, %v142_v17 }
 0x11e   :  { %v176_v25 = vpop.f32.mrf.mxu2 }
 0x11f   :  { %v177_v26 = vadd.f32 %v318_v24, %v176_v25 }
 0x121   :  { %v180_v27 = vmax.f32 %v177_v26, 0.0 }
 0x123   :  { %v181_v28 = vpack.c.bf16 %v180_v27, %v180_v27 }
 0x125   :  { %298 = vmatmul.msk.bf16.vlgmr.msra.gmra.mxu3 %vm163_vm4, %v181_v28 }
 0x126   :  { %v178_v29 = vpop.f32.mrf.mxu2 }
 0x1a8   :  { %v214_v31 = vpop.f32.mrf.mxu3 }
 0x1a9   :  { %v215_v32 = vadd.f32 %v319_v30, %v214_v31 }
 0x1ab   :  { %v218_v33 = vmax.f32 %v215_v32, 0.0 }
 0x1ad   :  { %v219_v34 = vpack.c.bf16 %v218_v33, %v218_v33 }
 0x1af   :  { %307 = vmatmul.msk.bf16.vlgmr.msrb.gmra.mxu0 %vm163_vm4, %v219_v34 }
 0x1b0   :  { %v216_v35 = vpop.f32.mrf.mxu3 }
 0x22c   :  { %v252_v37 = vpop.f32.mrf.mxu0 }
 0x22d   :  { %v253_v38 = vadd.f32 %v320_v36, %v252_v37 }
 0x22f   :  { %v256_v40 = vmax.f32 %v253_v38, 0.0 }
 0x231   :  { %v261_v41 = vmul.f32 %v321_v39, %v256_v40 }
 0x233   :  { %v263_v42 = vsel %vm262_vm5, %v261_v41, 0.0 }
 0x234   :  { %v254_v43 = vpop.f32.mrf.mxu0  ;;  %264 = vadd.xlane.f32.xlu0 %v263_v42 }
 0x2a7   :  { %v265_v45 = vpop.xlane.xlu0 %264 }
 0x2a8   :  { %v270_v46 = vadd.f32 %v322_v44, %v265_v45 }
 0x2aa   :  { %272 = vst.msk [vmem:[%s539_s13] sm:$0xff] %vm271_vm6, %v270_v46 }
 0x2ab   :  { %277 = vsyncpa [#allocation4], 1 }
 0x2ac   :  { %278 = vsyncpa [#allocation6], 1 }

</bundles_post_ra>
